<compile_context>
chip_gen: v5e
topology: v5e:2x2
jax: 0.10.0
libtpu: 0.0.40
codegen_flags: <defaults>
</compile_context>

<pallas_src>
import functools

import jax
import jax.numpy as jnp
from jax import lax
from jax.experimental import pallas as pl
from jax.experimental.pallas import tpu as pltpu

_LANE = 128


def _lrn_kernel(x_ref, o_ref, *, local_size, alpha, beta):
    # x_ref block: (1, C, TR, 128) -- full channel extent on a leading axis,
    # one (TR, 128) spatial tile in the vreg-mapped last two dims.
    x = x_ref[...].astype(jnp.float32)
    x2 = x * x
    C = x.shape[1]

    # AvgPool3d(kernel=(local_size,1,1), stride=1, pad=((local_size-1)//2,0,0))
    # with count_include_pad=True  ==>  zero-pad channels, divide by local_size.
    if local_size > 1:
        pad_lo = (local_size - 1) // 2
        pad_hi = local_size - 1 - pad_lo
        parts = []
        if pad_lo > 0:
            parts.append(jnp.zeros((1, pad_lo) + x2.shape[2:], jnp.float32))
        parts.append(x2)
        if pad_hi > 0:
            parts.append(jnp.zeros((1, pad_hi) + x2.shape[2:], jnp.float32))
        xp = jnp.concatenate(parts, axis=1)
        # Window sum via slices along the leading (non-vreg) channel axis:
        # tile-aligned copies + VPU adds only, no cross-sublane movement.
        acc = xp[:, 0:C]
        for k in range(1, local_size):          # static, fully unrolled window
            acc = acc + xp[:, k:k + C]
    else:
        acc = x2

    div = acc * (alpha / local_size) + 1.0      # 1 + alpha*avg(x^2); always >= 1

    if beta == 0.75:
        # div^-0.75 = div^-1/2 * div^-1/4 : two EUP rsqrts + VPU muls,
        # no exp/log/divide.
        r = lax.rsqrt(div)                      # div^-1/2
        inv_pow = r * lax.rsqrt(div * r)        # * div^-1/4
    elif beta == 1.0:
        inv_pow = 1.0 / div
    else:
        inv_pow = jnp.exp(-beta * jnp.log(div))  # div >= 1 -> log is safe

    o_ref[...] = (x * inv_pow).astype(o_ref.dtype)


def _plan_row_tiles(N, C, hw_rows, itemsize):
    """Pick (tile_rows, padded_total_rows) for the (1, C, TR, 128) block."""
    # Bytes per row-of-128-lanes across all C channels: double-buffered in/out
    # blocks in the native dtype plus ~4 block-sized f32 temporaries
    # (x, x^2, window acc, div/inv_pow).
    block_budget = 24 * 1024 * 1024             # conservative for v7x 64 MiB VMEM
    per_row_bytes = C * _LANE * (4 * itemsize + 4 * 4)
    max_tr = (block_budget // max(per_row_bytes, 1)) // 8 * 8
    max_tr = int(min(512, max(8, max_tr)))

    n_tiles = pl.cdiv(hw_rows, max_tr)
    if N == 1 and hw_rows >= 16:
        # Keep >= 2 grid steps so both v7x TensorCores get work.
        n_tiles = max(n_tiles, 2)
    if n_tiles <= 1:
        # Single tile: block row extent equals the full array extent, so it
        # need not be a multiple of 8 -> no row padding for small images.
        return hw_rows, hw_rows
    tr = pl.cdiv(pl.cdiv(hw_rows, n_tiles), 8) * 8   # balanced, 8-aligned tiles
    rows = pl.cdiv(hw_rows, tr) * tr
    return tr, rows


def lrn(x, local_size=1, alpha=1.0, beta=0.75, across_channels=True):
    """Pallas LRN forward. x: (N, C, H, W); matches torch LRN (ACROSS_CHANNELS=True)."""
    if not across_channels:
        # TODO(synk): ACROSS_CHANNELS=False (spatial AvgPool2d) path not implemented in-kernel.
        raise NotImplementedError("ACROSS_CHANNELS=False not implemented")

    N, C, H, W = x.shape
    HW = H * W
    itemsize = jnp.dtype(x.dtype).itemsize

    hw_rows = pl.cdiv(HW, _LANE)
    tr, R = _plan_row_tiles(N, C, hw_rows, itemsize)
    HW_pad = R * _LANE

    x3 = x.reshape(N, C, HW)
    if HW_pad != HW:
        # Zero padding is harmless: div >= 1 for padded elems, result 0, sliced
        # off below (only happens when H*W is not a multiple of 128*tr).
        x3 = jnp.pad(x3, ((0, 0), (0, 0), (0, HW_pad - HW)))
    x4 = x3.reshape(N, C, R, _LANE)

    kern = functools.partial(
        _lrn_kernel, local_size=local_size, alpha=alpha, beta=beta)

    out = pl.pallas_call(
        kern,
        out_shape=jax.ShapeDtypeStruct((N, C, R, _LANE), x.dtype),
        grid_spec=pltpu.PrefetchScalarGridSpec(
            num_scalar_prefetch=0,
            grid=(N, R // tr),
            in_specs=[pl.BlockSpec((1, C, tr, _LANE), lambda n, t: (n, 0, t, 0))],
            out_specs=pl.BlockSpec((1, C, tr, _LANE), lambda n, t: (n, 0, t, 0)),
        ),
        compiler_params=pltpu.CompilerParams(
            dimension_semantics=("parallel", "parallel"),
            vmem_limit_bytes=48 * 1024 * 1024),
    )(x4)

    out = out.reshape(N, C, HW_pad)
    if HW_pad != HW:
        out = out[:, :, :HW]
    return out.reshape(N, C, H, W)


def lrn_ref(x, local_size=1, alpha=1.0, beta=0.75):
    """Pure-JAX reference matching the PyTorch module (ACROSS_CHANNELS=True)."""
    x2 = x * x
    C = x.shape[1]
    pad_lo = (local_size - 1) // 2
    pad_hi = local_size - 1 - pad_lo
    xp = jnp.pad(x2, ((0, 0), (pad_lo, pad_hi), (0, 0), (0, 0)))
    acc = xp[:, 0:C]
    for k in range(1, local_size):
        acc = acc + xp[:, k:k + C]
    avg = acc / local_size
    div = (avg * alpha + 1.0) ** beta
    return x / div


if __name__ == "__main__":
    key = jax.random.PRNGKey(0)
    x = jax.random.normal(key, (2, 4, 16, 16), dtype=jnp.float32)

    # Tolerance slightly relaxed vs 1e-5: the beta=0.75 rsqrt-chain
    # specialization is not bit-identical to the exp/log pow reference.
    ATOL, RTOL = 1e-4, 1e-3

    # Default-constructed module: local_size=1, alpha=1.0, beta=0.75.
    out_default = jax.block_until_ready(lrn(x, local_size=1, alpha=1.0, beta=0.75))
    ref_default = lrn_ref(x, local_size=1, alpha=1.0, beta=0.75)
    assert jnp.allclose(out_default, ref_default, atol=ATOL, rtol=RTOL)

    # Non-trivial channel window (local_size=3).
    out3 = jax.block_until_ready(lrn(x, local_size=3, alpha=1e-4, beta=0.75))
    ref3 = lrn_ref(x, local_size=3, alpha=1e-4, beta=0.75)
    assert jnp.allclose(out3, ref3, atol=ATOL, rtol=RTOL)

    # Non-128-multiple spatial size + wider window: exercises the lane-padding
    # path and the channel-window sum with more channels.
    key2 = jax.random.PRNGKey(1)
    y = jax.random.normal(key2, (2, 8, 13, 13), dtype=jnp.float32)
    out5 = jax.block_until_ready(lrn(y, local_size=5, alpha=1e-4, beta=0.75))
    ref5 = lrn_ref(y, local_size=5, alpha=1e-4, beta=0.75)
    assert jnp.allclose(out5, ref5, atol=ATOL, rtol=RTOL)

    print("KERNEL_OK")
</pallas_src>

<mosaic_0001>
module attributes {stable_mosaic.version = 11 : i64} {
  func.func @_lrn_kernel(%arg0: i32, %arg1: i32, %arg2: memref<1x4x2x128xf32, #tpu.memory_space<vmem>>, %arg3: memref<1x4x2x128xf32, #tpu.memory_space<vmem>>) attributes {dimension_semantics = [#tpu.dimension_semantics<parallel>, #tpu.dimension_semantics<parallel>], iteration_bounds = array<i64: 2, 1>, scalar_prefetch = 0 : i64, scratch_operands = 0 : i64, tpu.core_type = #tpu.core_type<tc>, window_params = [{transform_indices = @transform_0, window_bounds = array<i64: 1, 4, 2, 128>}, {transform_indices = @transform_1, window_bounds = array<i64: 1, 4, 2, 128>}]} {
    %c0 = arith.constant 0 : index
    %c0_0 = arith.constant 0 : index
    %c0_1 = arith.constant 0 : index
    %c0_2 = arith.constant 0 : index
    %0 = vector.load %arg2[%c0, %c0_0, %c0_1, %c0_2] : memref<1x4x2x128xf32, #tpu.memory_space<vmem>>, vector<1x4x2x128xf32>
    %1 = arith.mulf %0, %0 : vector<1x4x2x128xf32>
    %cst = arith.constant 1.000000e+00 : f32
    %2 = vector.broadcast %cst : f32 to vector<1x4x2x128xf32>
    %3 = arith.mulf %1, %2 : vector<1x4x2x128xf32>
    %cst_3 = arith.constant 1.000000e+00 : f32
    %4 = vector.broadcast %cst_3 : f32 to vector<1x4x2x128xf32>
    %5 = arith.addf %3, %4 : vector<1x4x2x128xf32>
    %6 = math.rsqrt %5 : vector<1x4x2x128xf32>
    %7 = arith.mulf %5, %6 : vector<1x4x2x128xf32>
    %8 = math.rsqrt %7 : vector<1x4x2x128xf32>
    %9 = arith.mulf %6, %8 : vector<1x4x2x128xf32>
    %10 = arith.mulf %0, %9 : vector<1x4x2x128xf32>
    %c0_4 = arith.constant 0 : index
    %c0_5 = arith.constant 0 : index
    %c0_6 = arith.constant 0 : index
    %c0_7 = arith.constant 0 : index
    %11 = vector.load %arg3[%c0_4, %c0_5, %c0_6, %c0_7] : memref<1x4x2x128xf32, #tpu.memory_space<vmem>>, vector<1x4x2x128xf32>
    tpu.vector_store %arg3[%c0_4, %c0_5, %c0_6, %c0_7], %10 {strides = array<i32>} : memref<1x4x2x128xf32, #tpu.memory_space<vmem>>, vector<1x4x2x128xf32>,
    return
  }
  func.func @transform_0(%arg0: i32, %arg1: i32) -> (i32, i32, i32, i32) {
    %c0_i32 = arith.constant 0 : i32
    %c0_i32_0 = arith.constant 0 : i32
    %c0_i32_1 = arith.constant 0 : i32
    return %arg0, %c0_i32, %arg1, %c0_i32_0 : i32, i32, i32, i32
  }
  func.func @transform_1(%arg0: i32, %arg1: i32) -> (i32, i32, i32, i32) {
    %c0_i32 = arith.constant 0 : i32
    %c0_i32_0 = arith.constant 0 : i32
    %c0_i32_1 = arith.constant 0 : i32
    return %arg0, %c0_i32, %arg1, %c0_i32_0 : i32, i32, i32, i32
  }
}

</mosaic_0001>

<bundles_post_ra>
// kernel: tpu_custom_call.1
= control target key start
LH: loop header
LB: loop body
LE: loop exit
PB: predicated region body
PF: predicated region fallthrough
CT: control target
= control target key end

     0   :  { %6 = vsyncpa [#allocation3], 0  ;;  %s741_s0 = inlined_call_operand.hbm [shape: f32[2,4,2,128], index: 0, kind: input, shape index: {}]   ;;  %s742_s1 = inlined_call_operand.hbm [shape: f32[2,4,2,128], index: 1, kind: output, shape index: {}]  }
   0x1   :  { %8 = vsyncpa [#allocation3 + $0x1], 0 }
   0x2   :  { %9 = vsyncpa [#allocation4], 0 }
   0x3   :  { %11 = vsyncpa [#allocation4 + $0x1], 0  ;;  %s591_s6 = smov 0   ;;  %s593_s7 = smov 0  }
   0x4   :  { %s595_s8 = smov 0   ;;  %s597_s9 = smov 0  }
   0x5   :  { %s599_s10 = smov 0   ;;  %s601_s11 = smov 0  }
   0x6 LB: > { %s364_s12 = sadd.s32 4294967295, %s575_s11   ;;  %s365_s13 = sadd.s32 4294967294, %s575_s11   ;;  %s575_s11 = sphi %s601_s11, %s17_s11   ;;  %s571_s10 = sphi %s599_s10, %s753_s10   ;;  %s567_s9 = sphi %s597_s9, %s752_s9   ;;  %s563_s8 = sphi %s595_s8, %s751_s8   ;;  %s559_s7 = sphi %s593_s7, %s750_s7   ;;  %s555_s6 = sphi %s591_s6, %s749_s6  }
   0x7   : > { %s29_s14 = sadd.s32 1, %s571_s10  ;;  %s38_s15 = sadd.s32 1, %s563_s8 }
   0x8   : > { %p31_p0 = scmp.ge.s32.totalorder %s29_s14, 2  ;;  %p45_p1 = scmp.ne.s32.totalorder %s563_s8, %s559_s7 }
   0x9   : > { %p46_p2 = scmp.eq.s32.totalorder %s575_s11, 0  ;;  %p51_p3 = scmp.ne.s32.totalorder %s559_s7, %s555_s6 }
   0xa   : > { %s755_s14 = smov (%p31_p0, %s29_s14), 0  ;;  %p52_p5 = scmp.eq.s32.totalorder %s364_s12, 0 }
   0xb   : > { %p632_p4 = por %p46_p2, %p45_p1  ;;  %s33_s17 = ssub.s32 %s571_s10, %s755_s14 }
   0xc   : > { %p77_p6 = scmp.eq.s32.totalorder %s364_s12, 1  ;;  %p36_p7 = scmp.eq.s32.totalorder %s33_s17, 0 }
   0xd   : > { %p638_p8 = por %p52_p5, %p51_p3  ;;  %p83_p10 = scmp.eq.s32.totalorder %s365_s13, 1 }
   0xe   : > { %p642_p9 = por %p77_p6, %p45_p1  ;;  %p367_p12 = scmp.ge.s32.totalorder %s575_s11, 2 }
   0xf   : > { %s647_s20 = scalar_select %p36_p7, %s563_s8, %s38_s15  }
  0x10   : > { %p649_p11 = por %p83_p10, %p51_p3  ;;  %p393_p13 = scmp.lt.s32.totalorder %s575_s11, 2 }
  0x11   : > { %s103_s22 = sand.u32 1, %s563_s8   ;;  %s379_s24 = sshll.u32 %s571_s10, 3 }
  0x12   : > { %s368_s23 = sshll.u32 %s103_s22, 3  ;;  %s113_s27 = scalar_lea.hbm %s741_s0, %s379_s24 }
  0x13   : > { %s107_s28 = scalar_lea.vmem [#allocation2], %s368_s23  ;;  %s114_s30 = sshll.u32 %s113_s27, 4  ;;  %s115_s30 = int_to_ptr.hbm [resolvable:$true] %s114_s30 }
  0x14   : > { %s116_s29 = sshll.u32 %s107_s28, 4  ;;  %p386_p0 = pnand %p393_p13, %p632_p4  ;;  %s117_s29 = int_to_ptr.vmem [resolvable:$true] %s116_s29 }
  0x15   : > { %p371_p1 = scmp.ge.s32.totalorder %s575_s11, 1  ;;  %s104_s2 = scalar_lea.sflag [#allocation3], %s103_s22 }
  0x16   : > { %s577_s3 = smov 32   ;;  %s578_s4 = smov 2  }
  0x17   : > { %388 = dma.hbm_to_vmem [thread:$0]  (!%p386_p0), %s115_s30, 128, %s117_s29, %s104_s2, %s577_s3, %s577_s3, %s578_s4  }
  0x18   : > { %p124_p2 = scmp.lt.s32.totalorder %s575_s11, 3 }
  0x1a   : > { %p125_p3 = pnand %p371_p1, %p124_p2 }
  0x1b   : > { %s665_s5 = sand.u32 (!%p125_p3), 1, %s559_s7  }
  0x1c   : > { %128 = sbr.rel (%p125_p3) target bundleno = 88 (0x58), region = 24  ;;  %s372_s12 = sshll.u32 (!%p125_p3), %s665_s5, 3 }
  0x1d   : > { %s131_s13 = scalar_lea.sflag (!%p125_p3), [#allocation3], %s665_s5  ;;  %s134_s15 = scalar_lea.vmem (!%p125_p3), [#allocation2], %s372_s12 }
  0x21   : > { %546 = dma.done.wait (%p638_p8), %s131_s13, 128  }
  0x22   : > { %548 = vsyncadd (%p638_p8), %s131_s13, 4294967168  ;;  %v675_v0 = vld [vmem:[%s134_s15] sm:$0x3]  ;;  %v677_v1 = vld [vmem:[%s134_s15 + $0x2] sm:$0x3]  ;;  %s380_s16 = sshll.u32 %s567_s9, 3 }
  0x23   : > { %v679_v2 = vld [vmem:[%s134_s15 + $0x4] sm:$0x3]  ;;  %v158_v3 = vmul.f32 %v675_v0, %v675_v0  ;;  %v159_v4 = vmul.f32 %v677_v1, %v677_v1  ;;  %v687_v6 = vld [vmem:[%s134_s15 + $0x6] sm:$0x3]  ;;  %s275_s22 = scalar_lea.hbm %s742_s1, %s380_s16  ;;  %s153_s9 = scalar_lea.vmem [#allocation5], %s372_s12 }
  0x24   : > { %v160_v5 = vmul.f32 %v679_v2, %v679_v2  ;;  %v161_v7 = vmul.f32 %v687_v6, %v687_v6  ;;  %s276_s23 = sshll.u32 %s153_s9, 4  ;;  %s278_s24 = sshll.u32 %s275_s22, 4  ;;  %s277_s23 = int_to_ptr.vmem [resolvable:$true] %s276_s23  ;;  %s279_s24 = int_to_ptr.hbm [resolvable:$true] %s278_s24 }
  0x25   : > { %v162_v8 = vadd.f32 1.0, %v158_v3  ;;  %v163_v9 = vadd.f32 1.0, %v159_v4  ;;  %s263_s25 = scalar_lea.sflag [#allocation4], %s665_s5  ;;  %s507_s26 = sshra.s32 %s279_s24, 4  ;;  %s508_s26 = int_to_ptr.hbm [resolvable:$true] %s507_s26 }
  0x26   : > { %v164_v10 = vadd.f32 1.0, %v160_v5  ;;  %v165_v11 = vadd.f32 1.0, %v161_v7  ;;  %s509_s27 = scalar_lea.hbm %s508_s26, 8  ;;  %s513_s30 = scalar_lea.hbm %s742_s1, 16 }
  0x27   : > { %447 = vrsqrt.f32 %v162_v8  ;;  %vm172_vm0 = vweird.f32 %v162_v8  ;;  %vm182_vm2 = vweird.f32 %v163_v9  ;;  %p510_p4 = scmp.ne.s32.totalorder %s508_s26, %s509_s27  ;;  %p514_p7 = scmp.lt.s32.totalorder %s508_s26, %s742_s1 }
  0x28   : > { %449 = vrsqrt.f32 %v163_v9  ;;  %vm192_vm4 = vweird.f32 %v164_v10  ;;  %vm202_vm7 = vweird.f32 %v165_v11  ;;  %p515_p8 = scmp.lt.s32.totalorder %s513_s30, %s509_s27 }
  0x29   : > { %451 = vrsqrt.f32 %v164_v10  ;;  %p511_p5 = pnand %p510_p4, %p642_p9 }
  0x2a   : > { %453 = vrsqrt.f32 %v165_v11  ;;  %p516_p10 = por %p515_p8, %p514_p7 }
  0x2b   : > { %p512_p6 = pneg %p511_p5 }
  0x2d   : > { %v448_v12 = vpop.eup %447  ;;  %p517_p13 = pnand %p516_p10, %p512_p6 }
  0x2e   : > { %v450_v13 = vpop.eup %449  ;;  %v167_v14 = vmul.f32 %v448_v12, %v162_v8  ;;  %vm173_vm1 = vweird.f32 %v448_v12 }
  0x2f   : > { %v452_v15 = vpop.eup %451  ;;  %v177_v16 = vmul.f32 %v450_v13, %v163_v9  ;;  %vm183_vm3 = vweird.f32 %v450_v13  ;;  %vm174_vm6 = vmor %vm172_vm0, %vm173_vm1 }
  0x30   : > { %v454_v17 = vpop.eup %453  ;;  %v168_v18 = vmul.f32 %v448_v12, %v167_v14  ;;  %v187_v19 = vmul.f32 %v452_v15, %v164_v10  ;;  %vm193_vm5 = vweird.f32 %v452_v15  ;;  %vm184_vm9 = vmor %vm182_vm2, %vm183_vm3 }
  0x31   : > { %v178_v20 = vmul.f32 %v450_v13, %v177_v16  ;;  %v197_v21 = vmul.f32 %v454_v17, %v165_v11  ;;  %vm203_vm8 = vweird.f32 %v454_v17  ;;  %vm194_vm10 = vmor %vm192_vm4, %vm193_vm5 }
  0x32   : > { %v169_v22 = vmul.f32 0.5, %v168_v18  ;;  %v188_v23 = vmul.f32 %v452_v15, %v187_v19  ;;  %vm204_vm11 = vmor %vm202_vm7, %vm203_vm8 }
  0x33   : > { %v179_v24 = vmul.f32 0.5, %v178_v20  ;;  %v198_v25 = vmul.f32 %v454_v17, %v197_v21 }
  0x34   : > { %v170_v26 = vsub.f32 1.5, %v169_v22  ;;  %v189_v27 = vmul.f32 0.5, %v188_v23 }
  0x35   : > { %v180_v28 = vsub.f32 1.5, %v179_v24  ;;  %v199_v29 = vmul.f32 0.5, %v198_v25 }
  0x36   : > { %v171_v30 = vmul.f32 %v448_v12, %v170_v26  ;;  %v190_v31 = vsub.f32 1.5, %v189_v27 }
  0x37   : > { %v181_v32 = vmul.f32 %v450_v13, %v180_v28  ;;  %v200_v33 = vsub.f32 1.5, %v199_v29 }
  0x38   : > { %v175_v34 = vsel %vm174_vm6, %v448_v12, %v171_v30  ;;  %v191_v35 = vmul.f32 %v452_v15, %v190_v31 }
  0x39   : > { %v206_v36 = vmul.f32 %v175_v34, %v162_v8  ;;  %v185_v37 = vsel %vm184_vm9, %v450_v13, %v181_v32  ;;  %v201_v38 = vmul.f32 %v454_v17, %v200_v33 }
  0x3a   : > { %v207_v39 = vmul.f32 %v185_v37, %v163_v9  ;;  %v195_v40 = vsel %vm194_vm10, %v452_v15, %v191_v35 }
  0x3b   : > { %455 = vrsqrt.f32 %v206_v36  ;;  %v208_v41 = vmul.f32 %v195_v40, %v164_v10  ;;  %v205_v42 = vsel %vm204_vm11, %v454_v17, %v201_v38  ;;  %vm216_vm12 = vweird.f32 %v206_v36 }
  0x3c   : > { %457 = vrsqrt.f32 %v207_v39  ;;  %v209_v43 = vmul.f32 %v205_v42, %v165_v11  ;;  %vm226_vm14 = vweird.f32 %v207_v39 }
  0x3d   : > { %459 = vrsqrt.f32 %v208_v41  ;;  %vm236_vm0 = vweird.f32 %v208_v41 }
  0x3e   : > { %461 = vrsqrt.f32 %v209_v43  ;;  %vm246_vm3 = vweird.f32 %v209_v43 }
  0x41   : > { %v456_v44 = vpop.eup %455 }
  0x42   : > { %v458_v45 = vpop.eup %457  ;;  %v211_v46 = vmul.f32 %v456_v44, %v206_v36  ;;  %vm217_vm13 = vweird.f32 %v456_v44 }
  0x43   : > { %v460_v47 = vpop.eup %459  ;;  %v221_v48 = vmul.f32 %v458_v45, %v207_v39  ;;  %vm227_vm15 = vweird.f32 %v458_v45  ;;  %vm691_vm2 = vmor %vm216_vm12, %vm217_vm13 }
  0x44   : > { %v462_v49 = vpop.eup %461  ;;  %v212_v50 = vmul.f32 %v456_v44, %v211_v46  ;;  %v231_v51 = vmul.f32 %v460_v47, %v208_v41  ;;  %vm237_vm1 = vweird.f32 %v460_v47  ;;  %vm228_vm5 = vmor %vm226_vm14, %vm227_vm15 }
  0x45   : > { %v222_v52 = vmul.f32 %v458_v45, %v221_v48  ;;  %v241_v53 = vmul.f32 %v462_v49, %v209_v43  ;;  %vm247_vm4 = vweird.f32 %v462_v49  ;;  %vm238_vm6 = vmor %vm236_vm0, %vm237_vm1 }
  0x46   : > { %v213_v54 = vmul.f32 0.5, %v212_v50  ;;  %v232_v55 = vmul.f32 %v460_v47, %v231_v51  ;;  %vm248_vm7 = vmor %vm246_vm3, %vm247_vm4 }
  0x47   : > { %v223_v56 = vmul.f32 0.5, %v222_v52  ;;  %v242_v57 = vmul.f32 %v462_v49, %v241_v53 }
  0x48   : > { %v214_v58 = vsub.f32 1.5, %v213_v54  ;;  %v233_v59 = vmul.f32 0.5, %v232_v55 }
  0x49   : > { %v224_v61 = vsub.f32 1.5, %v223_v56  ;;  %v243_v62 = vmul.f32 0.5, %v242_v57 }
  0x4a   : > { %v215_v63 = vmul.f32 %v456_v44, %v214_v58  ;;  %v234_v3 = vsub.f32 1.5, %v233_v59 }
  0x4b   : > { %v225_v4 = vmul.f32 %v458_v45, %v224_v61  ;;  %v244_v5 = vsub.f32 1.5, %v243_v62 }
  0x4c   : > { %v219_v7 = vsel %vm691_vm2, %v456_v44, %v215_v63  ;;  %v235_v8 = vmul.f32 %v460_v47, %v234_v3 }
  0x4d   : > { %v250_v9 = vmul.f32 %v219_v7, %v175_v34  ;;  %v229_v10 = vsel %vm228_vm5, %v458_v45, %v225_v4  ;;  %v245_v11 = vmul.f32 %v462_v49, %v244_v5 }
  0x4e   : > { %v251_v12 = vmul.f32 %v229_v10, %v185_v37  ;;  %v239_v13 = vsel %vm238_vm6, %v460_v47, %v235_v8 }
  0x4f   : > { %v254_v14 = vmul.f32 %v250_v9, %v675_v0  ;;  %v252_v15 = vmul.f32 %v239_v13, %v195_v40  ;;  %v249_v16 = vsel %vm248_vm7, %v462_v49, %v245_v11 }
  0x50   : > { %v255_v17 = vmul.f32 %v251_v12, %v677_v1  ;;  %v253_v18 = vmul.f32 %v249_v16, %v205_v42 }
  0x51   : > { %258 = vst [vmem:[%s153_s9] sm:$0x3] %v254_v14  ;;  %v256_v19 = vmul.f32 %v252_v15, %v679_v2 }
  0x52   : > { %259 = vst [vmem:[%s153_s9 + $0x2] sm:$0x3] %v255_v17  ;;  %v257_v20 = vmul.f32 %v253_v18, %v687_v6 }
  0x53   : > { %260 = vst [vmem:[%s153_s9 + $0x4] sm:$0x3] %v256_v19 }
  0x54   : > { %261 = vst [vmem:[%s153_s9 + $0x6] sm:$0x3] %v257_v20 }
  0x55   : > { %520 = shalt.err (!%p517_p13)
}
  0x56   : > { %s579_s4 = smov 32   ;;  %s580_s5 = smov 2  }
  0x57   : > { %383 = dma.vmem_to_hbm [thread:$0]  (%p642_p9), %s277_s23, 128, %s279_s24, %s263_s25, %s579_s4, %s579_s4, %s580_s5  }
  0x58 PF: > { %s293_s12 = sand.u32 1, %s555_s6   ;;  %p390_p0 = pnand %p367_p12, %p649_p11 }
  0x59   : > { %s294_s13 = scalar_lea.sflag [#allocation4], %s293_s12 }
  0x5a   : > { %p391_p1 = pneg %p390_p0 }
  0x5c   : > { %550 = dma.done.wait (%p391_p1), %s294_s13, 128  }
  0x5d   : > { %552 = vsyncadd (%p391_p1), %s294_s13, 4294967168  ;;  %s17_s11 = sadd.s32 1, %s575_s11   ;;  %s749_s6 = smov %s559_s7 }
  0x5e   : > { %p14_p2 = scmp.ge.s32.totalorder %s17_s11, 4   ;;  %s750_s7 = smov %s563_s8 }
  0x5f   : > { %s751_s8 = smov %s647_s20  ;;  %s752_s9 = smov %s571_s10 }
  0x60   : > { %s753_s10 = smov %s755_s14  ;;  %16 = sbr.rel (!%p14_p2) target bundleno = 6 (0x6), region = 69 }
  0x65   :  { %300 = vsyncpa [#allocation3], 1 }
  0x66   :  { %302 = vsyncpa [#allocation3 + $0x1], 1 }
  0x67   :  { %303 = vsyncpa [#allocation4], 1 }
  0x68   :  { %305 = vsyncpa [#allocation4 + $0x1], 1 }

</bundles_post_ra>
